<compile_context>
chip_gen: v7x
topology: tpu7x:2x2x1
jax: 0.10.0
libtpu: 0.0.40
codegen_flags: <defaults>
</compile_context>

<pallas_src>
import jax
import jax.numpy as jnp
from jax.experimental import pallas as pl
from jax.experimental.pallas import tpu as pltpu


def _multi_interest_kernel(seq_ref, mask_ref, w1_ref, w2_ref, o_ref):
    # seq_ref : (BT, S, E)   matmul dtype (bf16 by default)
    # mask_ref: (BT, S)      f32 (1.0 = valid position, 0.0 = padded position)
    # w1_ref  : (E, H)       matmul dtype
    # w2_ref  : (H, K)       matmul dtype
    # o_ref   : (BT, K*E)    f32
    bt, s, e = seq_ref.shape
    k = w2_ref.shape[1]

    x3 = seq_ref[...]                                     # (BT, S, E)
    # Merging the two sublane-major leading dims is layout-preserving for S = 8
    # (multiple of the sublane tiling); other S would only cost a VMEM relayout.
    x2 = x3.reshape(bt * s, e)                             # (BT*S, E)
    m = mask_ref[...]                                      # (BT, S) f32

    # One large MXU matmul for the whole batch tile; f32 accumulation, f32 tanh.
    h = jnp.tanh(jnp.dot(x2, w1_ref[...],
                         preferred_element_type=jnp.float32))          # (BT*S, H) f32
    logits = jnp.dot(h.astype(w2_ref.dtype), w2_ref[...],
                     preferred_element_type=jnp.float32)               # (BT*S, K) f32
    # Additive -1e9 mask bias in f32, exactly like the PyTorch module (this also keeps
    # fully-masked rows finite: they degrade to a softmax of the raw logits).
    logits = logits.reshape(bt, s, k) + (-1000000000.0) * (1.0 - m)[:, :, None]

    # Softmax over the sequence axis (dim=1), all in f32.
    # TODO(synk): logits/p/a use only K(=4)/128 lanes; if a bundle dump shows VPU/EUP
    # saturating at block_b ~512-1024, restructure this block to a lane-dense layout
    # (sequence on sublanes, batch*K on lanes).
    mx = jnp.max(logits, axis=1, keepdims=True)                         # (BT, 1, K)
    p = jnp.exp(logits - mx)                                            # (BT, S, K)
    a = p * pl.reciprocal(jnp.sum(p, axis=1, keepdims=True), approx=True)

    # Epilogue: out[b, k, :] = sum_s a[b, s, k] * x[b, s, :] as S*K unrolled VPU
    # multiply-adds over (BT, E) slices, written straight into the lane-dense
    # (BT, K*E) output slab -- no per-example MXU matmuls, no concatenate.
    xf = x3.astype(jnp.float32)
    acc = [None] * k
    for si in range(s):
        x_s = xf[:, si, :]                                 # (BT, E) f32
        for ki in range(k):
            contrib = a[:, si, ki:ki + 1] * x_s            # (BT, E) f32
            acc[ki] = contrib if acc[ki] is None else acc[ki] + contrib
    for ki in range(k):
        o_ref[:, ki * e:(ki + 1) * e] = acc[ki].astype(o_ref.dtype)


def _pick_block_b(batch, seq_len):
    """Batch-tile size.

    Target ~4096 MXU rows (block_b * seq_len) per grid step (review band 2048-8192) so
    grid-step overhead is amortised, while capping block_b at 512 to stay well inside
    v7x's 64 MiB VMEM (x-tile + double buffering + f32 intermediates).  Prefer a
    block_b that divides the batch so there is neither a wrapper-level jnp.pad (full
    HBM copy of seq_emb) nor a ragged boundary block.
    """
    target_rows = 4096
    bt_cap = max(8, min(512, target_rows // max(seq_len, 1)))
    bt_cap = (bt_cap // 8) * 8
    if batch <= bt_cap:
        # Whole batch in a single block.  Block dims equal to the full array dims are
        # always legal; when batch is a multiple of 8 the output store is an unmasked
        # full-sublane store (negligible either way at this size).
        return batch
    # Largest multiple-of-8 divisor of `batch` that fits the cap.
    for bt in range(bt_cap, 7, -8):
        if batch % bt == 0:
            return bt
    # No aligned divisor (e.g. odd batch): fall back to a ragged last block (boundary
    # DMAs are clamped; tail rows are computed on leftover data and dropped on write-
    # back).  Still cheaper than jnp.pad'ing all of seq_emb through HBM.
    return bt_cap


def multi_interest_sa(seq_emb, mask, w1, w2, *, block_b=None,
                      matmul_dtype=jnp.bfloat16):
    """Pallas TPU forward of MultiInterestSA.

    seq_emb: (B, S, E); mask: (B, S, 1) / (B, S) / None; w1: (E, H); w2: (H, K).
    Returns (B, K, E) float32.
    """
    B, S, E = seq_emb.shape
    H = w1.shape[1]
    K = w2.shape[1]

    # Matmul operands in bf16 (f32 accumulation happens inside the kernel).  Under jit
    # this cast fuses with the upstream producer of seq_emb, halving the kernel's HBM
    # read traffic; pass matmul_dtype=jnp.float32 for the exact f32 path.
    x = seq_emb.astype(matmul_dtype)
    w1c = w1.astype(matmul_dtype)
    w2c = w2.astype(matmul_dtype)

    if mask is None:
        mask2d = jnp.ones((B, S), dtype=jnp.float32)
    else:
        mask2d = mask.reshape(B, S).astype(jnp.float32)

    if block_b is None:
        block_b = _pick_block_b(B, S)
    grid = pl.cdiv(B, block_b)

    out_flat = pl.pallas_call(
        _multi_interest_kernel,
        out_shape=jax.ShapeDtypeStruct((B, K * E), jnp.float32),
        grid_spec=pltpu.PrefetchScalarGridSpec(
            num_scalar_prefetch=0,
            grid=(grid,),
            in_specs=[
                pl.BlockSpec((block_b, S, E), lambda b: (b, 0, 0)),
                pl.BlockSpec((block_b, S), lambda b: (b, 0)),
                pl.BlockSpec((E, H), lambda b: (0, 0)),
                pl.BlockSpec((H, K), lambda b: (0, 0)),
            ],
            out_specs=pl.BlockSpec((block_b, K * E), lambda b: (b, 0)),
        ),
        compiler_params=pltpu.CompilerParams(
            dimension_semantics=("parallel",),
            # Larger-than-default scoped VMEM so 512-row tiles fit on v5e (16 MiB
            # default) while staying below v7x's 64 MiB physical VMEM.
            vmem_limit_bytes=48 * 1024 * 1024,
        ),
    )(x, mask2d, w1c, w2c)

    return out_flat.reshape(B, K, E)


def multi_interest_sa_ref(seq_emb, mask, w1, w2, matmul_dtype=jnp.float32):
    """Pure-JAX reference mirroring the PyTorch forward (optionally with the same
    bf16 matmul-operand rounding as the kernel's default path)."""
    x = seq_emb.astype(matmul_dtype)
    h = jnp.tanh(jnp.einsum("bse,ed->bsd", x, w1.astype(matmul_dtype),
                            preferred_element_type=jnp.float32))
    logits = jnp.einsum("bsd,dk->bsk", h.astype(matmul_dtype), w2.astype(matmul_dtype),
                        preferred_element_type=jnp.float32)
    if mask is not None:
        logits = logits + (-1000000000.0) * (
            1.0 - mask.reshape(logits.shape[0], logits.shape[1], 1).astype(jnp.float32))
    a = jax.nn.softmax(logits, axis=1)
    return jnp.einsum("bsk,bse->bke", a, x.astype(jnp.float32))


if __name__ == "__main__":
    # Module config: embedding_dim=32, interest_num=4, hidden_dim=None -> 4*32=128.
    E, K = 32, 4
    H = E * 4

    key = jax.random.PRNGKey(0)
    k_w1, k_w2, k_w3, k_data = jax.random.split(key, 4)

    # Parameters (torch.rand -> uniform [0, 1)).
    w1 = jax.random.uniform(k_w1, (E, H), dtype=jnp.float32)
    w2 = jax.random.uniform(k_w2, (H, K), dtype=jnp.float32)
    w3 = jax.random.uniform(k_w3, (E, E), dtype=jnp.float32)  # unused in forward (parity only)

    # Tolerances cover bf16/MXU default-precision rounding differences between the
    # Mosaic kernel and the XLA reference while still catching any structural error
    # (a wrong softmax axis / epilogue index would be off by O(0.3+)).
    TOL = dict(atol=5e-2, rtol=5e-2)

    cases = [
        dict(B=2, S=8, block_b=None),    # tiny batch, single (full-batch) block
        dict(B=40, S=8, block_b=None),   # single block, batch a multiple of 8
        dict(B=64, S=8, block_b=16),     # forced 4-step grid: multi-block pipeline path
    ]
    for cfg in cases:
        B, S, bb = cfg["B"], cfg["S"], cfg["block_b"]
        ks, km = jax.random.split(jax.random.fold_in(k_data, B), 2)
        seq_emb = jax.random.normal(ks, (B, S, E), dtype=jnp.float32)
        mask = (jax.random.uniform(km, (B, S, 1)) > 0.25).astype(jnp.float32)

        # Full-f32 path: exact module semantics vs. the pure-JAX reference.
        out32 = jax.block_until_ready(
            multi_interest_sa(seq_emb, mask, w1, w2, block_b=bb,
                              matmul_dtype=jnp.float32))
        ref32 = multi_interest_sa_ref(seq_emb, mask, w1, w2, matmul_dtype=jnp.float32)
        assert out32.shape == (B, K, E)
        assert jnp.allclose(out32, ref32, **TOL), f"f32 path mismatch at B={B}"

        # Default bf16-matmul path vs. a reference with matching operand rounding.
        out16 = jax.block_until_ready(
            multi_interest_sa(seq_emb, mask, w1, w2, block_b=bb))
        ref16 = multi_interest_sa_ref(seq_emb, mask, w1, w2, matmul_dtype=jnp.bfloat16)
        assert out16.shape == (B, K, E)
        assert jnp.allclose(out16, ref16, **TOL), f"bf16 path mismatch at B={B}"

    # mask=None branch (softmax over the full sequence).
    B, S = 2, 8
    seq_emb = jax.random.normal(jax.random.fold_in(k_data, 999), (B, S, E), jnp.float32)
    out_nm = jax.block_until_ready(
        multi_interest_sa(seq_emb, None, w1, w2, matmul_dtype=jnp.float32))
    ref_nm = multi_interest_sa_ref(seq_emb, None, w1, w2, matmul_dtype=jnp.float32)
    assert jnp.allclose(out_nm, ref_nm, **TOL), "mask=None path mismatch"

    print("KERNEL_OK")
</pallas_src>

<mosaic_0001>
module attributes {stable_mosaic.version = 11 : i64} {
  func.func @_multi_interest_kernel(%arg0: i32, %arg1: memref<2x8x32xf32, #tpu.memory_space<vmem>>, %arg2: memref<2x8xf32, #tpu.memory_space<vmem>>, %arg3: memref<32x128xf32, #tpu.memory_space<vmem>>, %arg4: memref<128x4xf32, #tpu.memory_space<vmem>>, %arg5: memref<2x128xf32, #tpu.memory_space<vmem>>) attributes {dimension_semantics = [#tpu.dimension_semantics<parallel>], iteration_bounds = array<i64: 1>, scalar_prefetch = 0 : i64, scratch_operands = 0 : i64, tpu.core_type = #tpu.core_type<tc>, window_params = [{transform_indices = @transform_0, window_bounds = array<i64: 2, 8, 32>}, {transform_indices = @transform_1, window_bounds = array<i64: 2, 8>}, {pipeline_mode = #tpu.pipeline_mode<synchronous>, transform_indices = @transform_2, window_bounds = array<i64: 32, 128>}, {pipeline_mode = #tpu.pipeline_mode<synchronous>, transform_indices = @transform_3, window_bounds = array<i64: 128, 4>}, {transform_indices = @transform_4, window_bounds = array<i64: 2, 128>}]} {
    %c0 = arith.constant 0 : index
    %c0_0 = arith.constant 0 : index
    %c0_1 = arith.constant 0 : index
    %0 = vector.load %arg1[%c0, %c0_0, %c0_1] : memref<2x8x32xf32, #tpu.memory_space<vmem>>, vector<2x8x32xf32>
    %1 = vector.shape_cast %0 : vector<2x8x32xf32> to vector<16x32xf32>
    %c0_2 = arith.constant 0 : index
    %c0_3 = arith.constant 0 : index
    %2 = vector.load %arg2[%c0_2, %c0_3] : memref<2x8xf32, #tpu.memory_space<vmem>>, vector<2x8xf32>
    %c0_4 = arith.constant 0 : index
    %c0_5 = arith.constant 0 : index
    %3 = vector.load %arg3[%c0_4, %c0_5] : memref<32x128xf32, #tpu.memory_space<vmem>>, vector<32x128xf32>
    %cst = arith.constant dense<0.000000e+00> : vector<16x128xf32>
    %4 = tpu.matmul %1, %3, %cst {dimension_numbers = #tpu.dot_dimension_numbers<[1], [0], [0], [1], [0, 0, 1, 1], [], []>} : vector<16x32xf32>, vector<32x128xf32>, vector<16x128xf32> -> vector<16x128xf32>
    %5 = math.tanh %4 : vector<16x128xf32>
    %c0_6 = arith.constant 0 : index
    %c0_7 = arith.constant 0 : index
    %6 = vector.load %arg4[%c0_6, %c0_7] : memref<128x4xf32, #tpu.memory_space<vmem>>, vector<128x4xf32>
    %cst_8 = arith.constant dense<0.000000e+00> : vector<16x4xf32>
    %7 = tpu.matmul %5, %6, %cst_8 {dimension_numbers = #tpu.dot_dimension_numbers<[1], [0], [0], [1], [0, 0, 1, 1], [], []>} : vector<16x128xf32>, vector<128x4xf32>, vector<16x4xf32> -> vector<16x4xf32>
    %8 = vector.shape_cast %7 : vector<16x4xf32> to vector<2x8x4xf32>
    %cst_9 = arith.constant 1.000000e+00 : f32
    %9 = vector.broadcast %cst_9 : f32 to vector<2x8xf32>
    %10 = arith.subf %9, %2 : vector<2x8xf32>
    %11 = vector.shape_cast %10 : vector<2x8xf32> to vector<2x8x1xf32>
    %cst_10 = arith.constant -1.000000e+09 : f32
    %12 = vector.broadcast %cst_10 : f32 to vector<2x8x1xf32>
    %13 = arith.mulf %12, %11 : vector<2x8x1xf32>
    %14 = vector.broadcast %13 : vector<2x8x1xf32> to vector<2x8x4xf32>
    %15 = arith.addf %8, %14 : vector<2x8x4xf32>
    %cst_11 = arith.constant dense<0xFF800000> : vector<2x4xf32>
    %16 = vector.multi_reduction <maximumf>, %15, %cst_11 [1] : vector<2x8x4xf32> to vector<2x4xf32>
    %17 = vector.shape_cast %16 : vector<2x4xf32> to vector<2x1x4xf32>
    %18 = vector.broadcast %17 : vector<2x1x4xf32> to vector<2x8x4xf32>
    %19 = arith.subf %15, %18 : vector<2x8x4xf32>
    %20 = math.exp %19 : vector<2x8x4xf32>
    %cst_12 = arith.constant dense<0.000000e+00> : vector<2x4xf32>
    %21 = vector.multi_reduction <add>, %20, %cst_12 [1] : vector<2x8x4xf32> to vector<2x4xf32>
    %22 = vector.shape_cast %21 : vector<2x4xf32> to vector<2x1x4xf32>
    %23 = tpu.reciprocal %22 {approx = true} : vector<2x1x4xf32> -> vector<2x1x4xf32>
    %24 = vector.broadcast %23 : vector<2x1x4xf32> to vector<2x8x4xf32>
    %25 = arith.mulf %20, %24 : vector<2x8x4xf32>
    %26 = vector.extract_strided_slice %0 {offsets = [0, 0, 0], sizes = [2, 1, 32], strides = [1, 1, 1]} : vector<2x8x32xf32> to vector<2x1x32xf32>
    %27 = vector.shape_cast %26 : vector<2x1x32xf32> to vector<2x32xf32>
    %28 = vector.extract_strided_slice %25 {offsets = [0, 0, 0], sizes = [2, 1, 1], strides = [1, 1, 1]} : vector<2x8x4xf32> to vector<2x1x1xf32>
    %29 = vector.shape_cast %28 : vector<2x1x1xf32> to vector<2x1xf32>
    %30 = vector.broadcast %29 : vector<2x1xf32> to vector<2x32xf32>
    %31 = arith.mulf %30, %27 : vector<2x32xf32>
    %32 = vector.extract_strided_slice %25 {offsets = [0, 0, 1], sizes = [2, 1, 1], strides = [1, 1, 1]} : vector<2x8x4xf32> to vector<2x1x1xf32>
    %33 = vector.shape_cast %32 : vector<2x1x1xf32> to vector<2x1xf32>
    %34 = vector.broadcast %33 : vector<2x1xf32> to vector<2x32xf32>
    %35 = arith.mulf %34, %27 : vector<2x32xf32>
    %36 = vector.extract_strided_slice %25 {offsets = [0, 0, 2], sizes = [2, 1, 1], strides = [1, 1, 1]} : vector<2x8x4xf32> to vector<2x1x1xf32>
    %37 = vector.shape_cast %36 : vector<2x1x1xf32> to vector<2x1xf32>
    %38 = vector.broadcast %37 : vector<2x1xf32> to vector<2x32xf32>
    %39 = arith.mulf %38, %27 : vector<2x32xf32>
    %40 = vector.extract_strided_slice %25 {offsets = [0, 0, 3], sizes = [2, 1, 1], strides = [1, 1, 1]} : vector<2x8x4xf32> to vector<2x1x1xf32>
    %41 = vector.shape_cast %40 : vector<2x1x1xf32> to vector<2x1xf32>
    %42 = vector.broadcast %41 : vector<2x1xf32> to vector<2x32xf32>
    %43 = arith.mulf %42, %27 : vector<2x32xf32>
    %44 = vector.extract_strided_slice %0 {offsets = [0, 1, 0], sizes = [2, 1, 32], strides = [1, 1, 1]} : vector<2x8x32xf32> to vector<2x1x32xf32>
    %45 = vector.shape_cast %44 : vector<2x1x32xf32> to vector<2x32xf32>
    %46 = vector.extract_strided_slice %25 {offsets = [0, 1, 0], sizes = [2, 1, 1], strides = [1, 1, 1]} : vector<2x8x4xf32> to vector<2x1x1xf32>
    %47 = vector.shape_cast %46 : vector<2x1x1xf32> to vector<2x1xf32>
    %48 = vector.broadcast %47 : vector<2x1xf32> to vector<2x32xf32>
    %49 = arith.mulf %48, %45 : vector<2x32xf32>
    %50 = arith.addf %31, %49 : vector<2x32xf32>
    %51 = vector.extract_strided_slice %25 {offsets = [0, 1, 1], sizes = [2, 1, 1], strides = [1, 1, 1]} : vector<2x8x4xf32> to vector<2x1x1xf32>
    %52 = vector.shape_cast %51 : vector<2x1x1xf32> to vector<2x1xf32>
    %53 = vector.broadcast %52 : vector<2x1xf32> to vector<2x32xf32>
    %54 = arith.mulf %53, %45 : vector<2x32xf32>
    %55 = arith.addf %35, %54 : vector<2x32xf32>
    %56 = vector.extract_strided_slice %25 {offsets = [0, 1, 2], sizes = [2, 1, 1], strides = [1, 1, 1]} : vector<2x8x4xf32> to vector<2x1x1xf32>
    %57 = vector.shape_cast %56 : vector<2x1x1xf32> to vector<2x1xf32>
    %58 = vector.broadcast %57 : vector<2x1xf32> to vector<2x32xf32>
    %59 = arith.mulf %58, %45 : vector<2x32xf32>
    %60 = arith.addf %39, %59 : vector<2x32xf32>
    %61 = vector.extract_strided_slice %25 {offsets = [0, 1, 3], sizes = [2, 1, 1], strides = [1, 1, 1]} : vector<2x8x4xf32> to vector<2x1x1xf32>
    %62 = vector.shape_cast %61 : vector<2x1x1xf32> to vector<2x1xf32>
    %63 = vector.broadcast %62 : vector<2x1xf32> to vector<2x32xf32>
    %64 = arith.mulf %63, %45 : vector<2x32xf32>
    %65 = arith.addf %43, %64 : vector<2x32xf32>
    %66 = vector.extract_strided_slice %0 {offsets = [0, 2, 0], sizes = [2, 1, 32], strides = [1, 1, 1]} : vector<2x8x32xf32> to vector<2x1x32xf32>
    %67 = vector.shape_cast %66 : vector<2x1x32xf32> to vector<2x32xf32>
    %68 = vector.extract_strided_slice %25 {offsets = [0, 2, 0], sizes = [2, 1, 1], strides = [1, 1, 1]} : vector<2x8x4xf32> to vector<2x1x1xf32>
    %69 = vector.shape_cast %68 : vector<2x1x1xf32> to vector<2x1xf32>
    %70 = vector.broadcast %69 : vector<2x1xf32> to vector<2x32xf32>
    %71 = arith.mulf %70, %67 : vector<2x32xf32>
    %72 = arith.addf %50, %71 : vector<2x32xf32>
    %73 = vector.extract_strided_slice %25 {offsets = [0, 2, 1], sizes = [2, 1, 1], strides = [1, 1, 1]} : vector<2x8x4xf32> to vector<2x1x1xf32>
    %74 = vector.shape_cast %73 : vector<2x1x1xf32> to vector<2x1xf32>
    %75 = vector.broadcast %74 : vector<2x1xf32> to vector<2x32xf32>
    %76 = arith.mulf %75, %67 : vector<2x32xf32>
    %77 = arith.addf %55, %76 : vector<2x32xf32>
    %78 = vector.extract_strided_slice %25 {offsets = [0, 2, 2], sizes = [2, 1, 1], strides = [1, 1, 1]} : vector<2x8x4xf32> to vector<2x1x1xf32>
    %79 = vector.shape_cast %78 : vector<2x1x1xf32> to vector<2x1xf32>
    %80 = vector.broadcast %79 : vector<2x1xf32> to vector<2x32xf32>
    %81 = arith.mulf %80, %67 : vector<2x32xf32>
    %82 = arith.addf %60, %81 : vector<2x32xf32>
    %83 = vector.extract_strided_slice %25 {offsets = [0, 2, 3], sizes = [2, 1, 1], strides = [1, 1, 1]} : vector<2x8x4xf32> to vector<2x1x1xf32>
    %84 = vector.shape_cast %83 : vector<2x1x1xf32> to vector<2x1xf32>
    %85 = vector.broadcast %84 : vector<2x1xf32> to vector<2x32xf32>
    %86 = arith.mulf %85, %67 : vector<2x32xf32>
    %87 = arith.addf %65, %86 : vector<2x32xf32>
    %88 = vector.extract_strided_slice %0 {offsets = [0, 3, 0], sizes = [2, 1, 32], strides = [1, 1, 1]} : vector<2x8x32xf32> to vector<2x1x32xf32>
    %89 = vector.shape_cast %88 : vector<2x1x32xf32> to vector<2x32xf32>
    %90 = vector.extract_strided_slice %25 {offsets = [0, 3, 0], sizes = [2, 1, 1], strides = [1, 1, 1]} : vector<2x8x4xf32> to vector<2x1x1xf32>
    %91 = vector.shape_cast %90 : vector<2x1x1xf32> to vector<2x1xf32>
    %92 = vector.broadcast %91 : vector<2x1xf32> to vector<2x32xf32>
    %93 = arith.mulf %92, %89 : vector<2x32xf32>
    %94 = arith.addf %72, %93 : vector<2x32xf32>
    %95 = vector.extract_strided_slice %25 {offsets = [0, 3, 1], sizes = [2, 1, 1], strides = [1, 1, 1]} : vector<2x8x4xf32> to vector<2x1x1xf32>
    %96 = vector.shape_cast %95 : vector<2x1x1xf32> to vector<2x1xf32>
    %97 = vector.broadcast %96 : vector<2x1xf32> to vector<2x32xf32>
    %98 = arith.mulf %97, %89 : vector<2x32xf32>
    %99 = arith.addf %77, %98 : vector<2x32xf32>
    %100 = vector.extract_strided_slice %25 {offsets = [0, 3, 2], sizes = [2, 1, 1], strides = [1, 1, 1]} : vector<2x8x4xf32> to vector<2x1x1xf32>
    %101 = vector.shape_cast %100 : vector<2x1x1xf32> to vector<2x1xf32>
    %102 = vector.broadcast %101 : vector<2x1xf32> to vector<2x32xf32>
    %103 = arith.mulf %102, %89 : vector<2x32xf32>
    %104 = arith.addf %82, %103 : vector<2x32xf32>
    %105 = vector.extract_strided_slice %25 {offsets = [0, 3, 3], sizes = [2, 1, 1], strides = [1, 1, 1]} : vector<2x8x4xf32> to vector<2x1x1xf32>
    %106 = vector.shape_cast %105 : vector<2x1x1xf32> to vector<2x1xf32>
    %107 = vector.broadcast %106 : vector<2x1xf32> to vector<2x32xf32>
    %108 = arith.mulf %107, %89 : vector<2x32xf32>
    %109 = arith.addf %87, %108 : vector<2x32xf32>
    %110 = vector.extract_strided_slice %0 {offsets = [0, 4, 0], sizes = [2, 1, 32], strides = [1, 1, 1]} : vector<2x8x32xf32> to vector<2x1x32xf32>
    %111 = vector.shape_cast %110 : vector<2x1x32xf32> to vector<2x32xf32>
    %112 = vector.extract_strided_slice %25 {offsets = [0, 4, 0], sizes = [2, 1, 1], strides = [1, 1, 1]} : vector<2x8x4xf32> to vector<2x1x1xf32>
    %113 = vector.shape_cast %112 : vector<2x1x1xf32> to vector<2x1xf32>
    %114 = vector.broadcast %113 : vector<2x1xf32> to vector<2x32xf32>
    %115 = arith.mulf %114, %111 : vector<2x32xf32>
    %116 = arith.addf %94, %115 : vector<2x32xf32>
    %117 = vector.extract_strided_slice %25 {offsets = [0, 4, 1], sizes = [2, 1, 1], strides = [1, 1, 1]} : vector<2x8x4xf32> to vector<2x1x1xf32>
    %118 = vector.shape_cast %117 : vector<2x1x1xf32> to vector<2x1xf32>
    %119 = vector.broadcast %118 : vector<2x1xf32> to vector<2x32xf32>
    %120 = arith.mulf %119, %111 : vector<2x32xf32>
    %121 = arith.addf %99, %120 : vector<2x32xf32>
    %122 = vector.extract_strided_slice %25 {offsets = [0, 4, 2], sizes = [2, 1, 1], strides = [1, 1, 1]} : vector<2x8x4xf32> to vector<2x1x1xf32>
    %123 = vector.shape_cast %122 : vector<2x1x1xf32> to vector<2x1xf32>
    %124 = vector.broadcast %123 : vector<2x1xf32> to vector<2x32xf32>
    %125 = arith.mulf %124, %111 : vector<2x32xf32>
    %126 = arith.addf %104, %125 : vector<2x32xf32>
    %127 = vector.extract_strided_slice %25 {offsets = [0, 4, 3], sizes = [2, 1, 1], strides = [1, 1, 1]} : vector<2x8x4xf32> to vector<2x1x1xf32>
    %128 = vector.shape_cast %127 : vector<2x1x1xf32> to vector<2x1xf32>
    %129 = vector.broadcast %128 : vector<2x1xf32> to vector<2x32xf32>
    %130 = arith.mulf %129, %111 : vector<2x32xf32>
    %131 = arith.addf %109, %130 : vector<2x32xf32>
    %132 = vector.extract_strided_slice %0 {offsets = [0, 5, 0], sizes = [2, 1, 32], strides = [1, 1, 1]} : vector<2x8x32xf32> to vector<2x1x32xf32>
    %133 = vector.shape_cast %132 : vector<2x1x32xf32> to vector<2x32xf32>
    %134 = vector.extract_strided_slice %25 {offsets = [0, 5, 0], sizes = [2, 1, 1], strides = [1, 1, 1]} : vector<2x8x4xf32> to vector<2x1x1xf32>
    %135 = vector.shape_cast %134 : vector<2x1x1xf32> to vector<2x1xf32>
    %136 = vector.broadcast %135 : vector<2x1xf32> to vector<2x32xf32>
    %137 = arith.mulf %136, %133 : vector<2x32xf32>
    %138 = arith.addf %116, %137 : vector<2x32xf32>
    %139 = vector.extract_strided_slice %25 {offsets = [0, 5, 1], sizes = [2, 1, 1], strides = [1, 1, 1]} : vector<2x8x4xf32> to vector<2x1x1xf32>
    %140 = vector.shape_cast %139 : vector<2x1x1xf32> to vector<2x1xf32>
    %141 = vector.broadcast %140 : vector<2x1xf32> to vector<2x32xf32>
    %142 = arith.mulf %141, %133 : vector<2x32xf32>
    %143 = arith.addf %121, %142 : vector<2x32xf32>
    %144 = vector.extract_strided_slice %25 {offsets = [0, 5, 2], sizes = [2, 1, 1], strides = [1, 1, 1]} : vector<2x8x4xf32> to vector<2x1x1xf32>
    %145 = vector.shape_cast %144 : vector<2x1x1xf32> to vector<2x1xf32>
    %146 = vector.broadcast %145 : vector<2x1xf32> to vector<2x32xf32>
    %147 = arith.mulf %146, %133 : vector<2x32xf32>
    %148 = arith.addf %126, %147 : vector<2x32xf32>
    %149 = vector.extract_strided_slice %25 {offsets = [0, 5, 3], sizes = [2, 1, 1], strides = [1, 1, 1]} : vector<2x8x4xf32> to vector<2x1x1xf32>
    %150 = vector.shape_cast %149 : vector<2x1x1xf32> to vector<2x1xf32>
    %151 = vector.broadcast %150 : vector<2x1xf32> to vector<2x32xf32>
    %152 = arith.mulf %151, %133 : vector<2x32xf32>
    %153 = arith.addf %131, %152 : vector<2x32xf32>
    %154 = vector.extract_strided_slice %0 {offsets = [0, 6, 0], sizes = [2, 1, 32], strides = [1, 1, 1]} : vector<2x8x32xf32> to vector<2x1x32xf32>
    %155 = vector.shape_cast %154 : vector<2x1x32xf32> to vector<2x32xf32>
    %156 = vector.extract_strided_slice %25 {offsets = [0, 6, 0], sizes = [2, 1, 1], strides = [1, 1, 1]} : vector<2x8x4xf32> to vector<2x1x1xf32>
    %157 = vector.shape_cast %156 : vector<2x1x1xf32> to vector<2x1xf32>
    %158 = vector.broadcast %157 : vector<2x1xf32> to vector<2x32xf32>
    %159 = arith.mulf %158, %155 : vector<2x32xf32>
    %160 = arith.addf %138, %159 : vector<2x32xf32>
    %161 = vector.extract_strided_slice %25 {offsets = [0, 6, 1], sizes = [2, 1, 1], strides = [1, 1, 1]} : vector<2x8x4xf32> to vector<2x1x1xf32>
    %162 = vector.shape_cast %161 : vector<2x1x1xf32> to vector<2x1xf32>
    %163 = vector.broadcast %162 : vector<2x1xf32> to vector<2x32xf32>
    %164 = arith.mulf %163, %155 : vector<2x32xf32>
    %165 = arith.addf %143, %164 : vector<2x32xf32>
    %166 = vector.extract_strided_slice %25 {offsets = [0, 6, 2], sizes = [2, 1, 1], strides = [1, 1, 1]} : vector<2x8x4xf32> to vector<2x1x1xf32>
    %167 = vector.shape_cast %166 : vector<2x1x1xf32> to vector<2x1xf32>
    %168 = vector.broadcast %167 : vector<2x1xf32> to vector<2x32xf32>
    %169 = arith.mulf %168, %155 : vector<2x32xf32>
    %170 = arith.addf %148, %169 : vector<2x32xf32>
    %171 = vector.extract_strided_slice %25 {offsets = [0, 6, 3], sizes = [2, 1, 1], strides = [1, 1, 1]} : vector<2x8x4xf32> to vector<2x1x1xf32>
    %172 = vector.shape_cast %171 : vector<2x1x1xf32> to vector<2x1xf32>
    %173 = vector.broadcast %172 : vector<2x1xf32> to vector<2x32xf32>
    %174 = arith.mulf %173, %155 : vector<2x32xf32>
    %175 = arith.addf %153, %174 : vector<2x32xf32>
    %176 = vector.extract_strided_slice %0 {offsets = [0, 7, 0], sizes = [2, 1, 32], strides = [1, 1, 1]} : vector<2x8x32xf32> to vector<2x1x32xf32>
    %177 = vector.shape_cast %176 : vector<2x1x32xf32> to vector<2x32xf32>
    %178 = vector.extract_strided_slice %25 {offsets = [0, 7, 0], sizes = [2, 1, 1], strides = [1, 1, 1]} : vector<2x8x4xf32> to vector<2x1x1xf32>
    %179 = vector.shape_cast %178 : vector<2x1x1xf32> to vector<2x1xf32>
    %180 = vector.broadcast %179 : vector<2x1xf32> to vector<2x32xf32>
    %181 = arith.mulf %180, %177 : vector<2x32xf32>
    %182 = arith.addf %160, %181 : vector<2x32xf32>
    %183 = vector.extract_strided_slice %25 {offsets = [0, 7, 1], sizes = [2, 1, 1], strides = [1, 1, 1]} : vector<2x8x4xf32> to vector<2x1x1xf32>
    %184 = vector.shape_cast %183 : vector<2x1x1xf32> to vector<2x1xf32>
    %185 = vector.broadcast %184 : vector<2x1xf32> to vector<2x32xf32>
    %186 = arith.mulf %185, %177 : vector<2x32xf32>
    %187 = arith.addf %165, %186 : vector<2x32xf32>
    %188 = vector.extract_strided_slice %25 {offsets = [0, 7, 2], sizes = [2, 1, 1], strides = [1, 1, 1]} : vector<2x8x4xf32> to vector<2x1x1xf32>
    %189 = vector.shape_cast %188 : vector<2x1x1xf32> to vector<2x1xf32>
    %190 = vector.broadcast %189 : vector<2x1xf32> to vector<2x32xf32>
    %191 = arith.mulf %190, %177 : vector<2x32xf32>
    %192 = arith.addf %170, %191 : vector<2x32xf32>
    %193 = vector.extract_strided_slice %25 {offsets = [0, 7, 3], sizes = [2, 1, 1], strides = [1, 1, 1]} : vector<2x8x4xf32> to vector<2x1x1xf32>
    %194 = vector.shape_cast %193 : vector<2x1x1xf32> to vector<2x1xf32>
    %195 = vector.broadcast %194 : vector<2x1xf32> to vector<2x32xf32>
    %196 = arith.mulf %195, %177 : vector<2x32xf32>
    %197 = arith.addf %175, %196 : vector<2x32xf32>
    %c0_13 = arith.constant 0 : index
    %c0_14 = arith.constant 0 : index
    %198 = vector.load %arg5[%c0_13, %c0_14] : memref<2x128xf32, #tpu.memory_space<vmem>>, vector<2x32xf32>
    tpu.vector_store %arg5[%c0_13, %c0_14], %182 {strides = array<i32>} : memref<2x128xf32, #tpu.memory_space<vmem>>, vector<2x32xf32>,
    %c0_15 = arith.constant 0 : index
    %c32 = arith.constant 32 : index
    %199 = vector.load %arg5[%c0_15, %c32] : memref<2x128xf32, #tpu.memory_space<vmem>>, vector<2x32xf32>
    tpu.vector_store %arg5[%c0_15, %c32], %187 {strides = array<i32>} : memref<2x128xf32, #tpu.memory_space<vmem>>, vector<2x32xf32>,
    %c0_16 = arith.constant 0 : index
    %c64 = arith.constant 64 : index
    %200 = vector.load %arg5[%c0_16, %c64] : memref<2x128xf32, #tpu.memory_space<vmem>>, vector<2x32xf32>
    tpu.vector_store %arg5[%c0_16, %c64], %192 {strides = array<i32>} : memref<2x128xf32, #tpu.memory_space<vmem>>, vector<2x32xf32>,
    %c0_17 = arith.constant 0 : index
    %c96 = arith.constant 96 : index
    %201 = vector.load %arg5[%c0_17, %c96] : memref<2x128xf32, #tpu.memory_space<vmem>>, vector<2x32xf32>
    tpu.vector_store %arg5[%c0_17, %c96], %197 {strides = array<i32>} : memref<2x128xf32, #tpu.memory_space<vmem>>, vector<2x32xf32>,
    return
  }
  func.func @transform_0(%arg0: i32) -> (i32, i32, i32) {
    %c0_i32 = arith.constant 0 : i32
    %c0_i32_0 = arith.constant 0 : i32
    %c0_i32_1 = arith.constant 0 : i32
    return %arg0, %c0_i32, %c0_i32_0 : i32, i32, i32
  }
  func.func @transform_1(%arg0: i32) -> (i32, i32) {
    %c0_i32 = arith.constant 0 : i32
    %c0_i32_0 = arith.constant 0 : i32
    return %arg0, %c0_i32 : i32, i32
  }
  func.func @transform_2(%arg0: i32) -> (i32, i32) {
    %c0_i32 = arith.constant 0 : i32
    %c0_i32_0 = arith.constant 0 : i32
    %c0_i32_1 = arith.constant 0 : i32
    return %c0_i32, %c0_i32_0 : i32, i32
  }
  func.func @transform_3(%arg0: i32) -> (i32, i32) {
    %c0_i32 = arith.constant 0 : i32
    %c0_i32_0 = arith.constant 0 : i32
    %c0_i32_1 = arith.constant 0 : i32
    return %c0_i32, %c0_i32_0 : i32, i32
  }
  func.func @transform_4(%arg0: i32) -> (i32, i32) {
    %c0_i32 = arith.constant 0 : i32
    %c0_i32_0 = arith.constant 0 : i32
    return %arg0, %c0_i32 : i32, i32
  }
}

</mosaic_0001>

<bundles_post_ra>
// kernel: tpu_custom_call.1
= control target key start
LH: loop header
LB: loop body
LE: loop exit
PB: predicated region body
PF: predicated region fallthrough
CT: control target
= control target key end

     0   :  { %vm25_vm0 = vcmask 261120   ;;  %s876_s0 = inlined_call_operand.vmem [shape: f32[2,8,32], index: 0, kind: input, shape index: {}]   ;;  %s877_s1 = inlined_call_operand.vmem [shape: f32[2,8], index: 1, kind: input, shape index: {}]   ;;  %s878_s2 = inlined_call_operand.vmem [shape: f32[32,128], index: 2, kind: input, shape index: {}]   ;;  %s879_s3 = inlined_call_operand.vmem [shape: f32[128,4], index: 3, kind: input, shape index: {}]   ;;  %s880_s4 = inlined_call_operand.hbm [shape: f32[2,128], index: 4, kind: output, shape index: {}]  }
   0x1   :  { %v21_v0 = vld [vmem:[%s878_s2] sm:$0xff]  ;;  %v22_v1 = vld [vmem:[%s878_s2 + $0x8] sm:$0xff]  ;;  %v23_v2 = vld [vmem:[%s878_s2 + $0x10] sm:$0xff] }
   0x2   :  { %v597_v3 = vpack.c.bf16 %v22_v1, %v21_v0  ;;  %v24_v4 = vld [vmem:[%s878_s2 + $0x18] sm:$0xff]  ;;  %v736_v5 = vld [vmem:[%s876_s0] sm:$0xff]  ;;  %v110_v8 = vld [vmem:[%s879_s3 + $0x8] sm:$0xff] }
   0x3   :  { %v601_v6 = vpack.c.bf16 %v24_v4, %v23_v2  ;;  %559 = vmatprep.mubr.msk.f32.mxu0 %vm25_vm0, %v736_v5  ;;  %v109_v7 = vld [vmem:[%s879_s3] sm:$0xff]  ;;  %v111_v9 = vld [vmem:[%s879_s3 + $0x10] sm:$0xff]  ;;  %v112_v11 = vld [vmem:[%s879_s3 + $0x18] sm:$0xff] }
   0x4   :  { %598 = vmatprep.subr.bf16.mxu0 %v597_v3  ;;  %v605_v10 = vpack.c.bf16 %v110_v8, %v109_v7  ;;  %v609_v12 = vpack.c.bf16 %v112_v11, %v111_v9  ;;  %v113_v13 = vld [vmem:[%s879_s3 + $0x20] sm:$0xff]  ;;  %v114_v14 = vld [vmem:[%s879_s3 + $0x28] sm:$0xff] }
   0x5   :  { %600 = vmatpush3.bf16.msra.mxu0 %v597_v3 }
   0x6   :  { %602 = vmatprep.subr.bf16.mxu0 %v601_v6  ;;  %606 = vmatprep.subr.bf16.mxu1 %v605_v10 }
   0x7   :  { %9 = vsyncpa [#allocation3], 0  ;;  %608 = vmatpush3.bf16.msra.mxu1 %v605_v10  ;;  %v613_v15 = vpack.c.bf16 %v114_v14, %v113_v13  ;;  %v761_v16 = vld [vmem:[%s876_s0 + $0x8] sm:$0xff]  ;;  %v115_v17 = vld [vmem:[%s879_s3 + $0x30] sm:$0xff]  ;;  %v201_v33 = vlaneseq  ;;  %v688_v44 = vmov 1   ;;  %vm219_vm1 = vcmask 31744  }
   0x8   :  { %610 = vmatprep.subr.bf16.mxu1 %v609_v12  ;;  %v116_v18 = vld [vmem:[%s879_s3 + $0x38] sm:$0xff]  ;;  %v117_v20 = vld [vmem:[%s879_s3 + $0x40] sm:$0xff]  ;;  %v118_v21 = vld [vmem:[%s879_s3 + $0x48] sm:$0xff]  ;;  %645 = vset.pattern.permute.xlu1 %v688_v44  ;;  %vm479_vm2 = vcmask 1041409   ;;  %s694_s6 = smov 64   ;;  %vm482_vm3 = vcmask 254976  }
   0x9   :  { %604 = vmatpush3.bf16.msra.mxu0 %v601_v6  ;;  %v617_v19 = vpack.c.bf16 %v116_v18, %v115_v17  ;;  %v621_v22 = vpack.c.bf16 %v118_v21, %v117_v20  ;;  %v119_v23 = vld [vmem:[%s879_s3 + $0x50] sm:$0xff]  ;;  %v120_v24 = vld [vmem:[%s879_s3 + $0x58] sm:$0xff]  ;;  %v121_v26 = vld [vmem:[%s879_s3 + $0x60] sm:$0xff]  ;;  %v202_v35 = vshrl.u32 %v201_v33, 7  ;;  %648 = vset.pattern.permute.xlu0 %v688_v44  ;;  %vm491_vm4 = vcmask 517376   ;;  %s695_s7 = smov [#allocation2]  }
   0xa   :  { %v625_v25 = vpack.c.bf16 %v120_v24, %v119_v23  ;;  %v122_v27 = vld [vmem:[%s879_s3 + $0x68] sm:$0xff]  ;;  %v123_v28 = vld [vmem:[%s879_s3 + $0x70] sm:$0xff]  ;;  %v124_v30 = vld [vmem:[%s879_s3 + $0x78] sm:$0xff]  ;;  %s693_s3 = smov 96   ;;  %s517_s8 = sshll.u32 %s695_s7, 4  ;;  %vm500_vm5 = vcmask 779776   ;;  %s518_s8 = int_to_ptr.vmem [resolvable:$true] %s517_s8 }
   0xb   :  { %612 = vmatpush3.bf16.msra.mxu1 %v609_v12  ;;  %v629_v29 = vpack.c.bf16 %v122_v27, %v121_v26  ;;  %v633_v31 = vpack.c.bf16 %v124_v30, %v123_v28  ;;  %v20_v32 = vld [vmem:[%s877_s1] sm:$0x3]  ;;  %v210_v36 = vsub.s32 1, %v202_v35  ;;  %v203_v37 = vsub.s32 0, %v202_v35  ;;  %s692_s1 = smov 32   ;;  %s664_s9 = scalar_lea.vmem %s518_s8, 32 }
   0xc   :  { %560 = vmatmul.mubr.msk.f32.vlgmr.msra.gmra.mrb[0].mxu0 %vm25_vm0, %v761_v16  ;;  %614 = vmatprep.subr.bf16.mxu1 %v613_v15  ;;  %v200_v34 = vsub.f32 1.0, %v20_v32  ;;  %v690_v30 = vmov 3   ;;  %vm509_vm6 = vcmask 1042176   ;;  %p665_p0 = scmp.ne.s32.totalorder %s518_s8, %s664_s9  ;;  %p669_p1 = scmp.lt.s32.totalorder %s518_s8, %s518_s8 }
   0xd   :  { %p670_p2 = scmp.lt.s32.totalorder %s664_s9, %s664_s9 }
   0xe   :  { %v211_v38 = vrot.slane %v200_v34, %v210_v36  ;;  %v204_v39 = vrot.slane %v200_v34, %v203_v37 }
   0xf   :  { %616 = vmatpush3.bf16.msra.mxu1 %v613_v15  ;;  %p671_p3 = por %p670_p2, %p669_p1 }
  0x10   :  { %618 = vmatprep.subr.bf16.mxu1 %v617_v19  ;;  %213 = vbcast.lane.b32.xlu0 %v211_v38, 256 }
  0x11   :  { %p672_p4 = pnand %p671_p3, %p665_p0 }
  0x13   :  { %620 = vmatpush3.bf16.msra.mxu1 %v617_v19 }
  0x14   :  { %622 = vmatprep.subr.bf16.mxu1 %v621_v22  ;;  %206 = vbcast.lane.b32.xlu0 %v204_v39, 256 }
  0x17   :  { %624 = vmatpush3.bf16.msra.mxu1 %v621_v22 }
  0x18   :  { %626 = vmatprep.subr.bf16.mxu1 %v625_v25 }
  0x1b   :  { %628 = vmatpush3.bf16.msra.mxu1 %v625_v25 }
  0x1c   :  { %630 = vmatprep.subr.bf16.mxu1 %v629_v29 }
  0x1f   :  { %632 = vmatpush3.bf16.msra.mxu1 %v629_v29  ;;  %v689_v29 = vmov 2  }
  0x20   :  { %634 = vmatprep.subr.bf16.mxu1 %v633_v31 }
  0x23   :  { %636 = vmatpush3.bf16.msra.mxu1 %v633_v31  ;;  %v691_v31 = vmov 0  }
  0x82   :  { %v214_v45 = vpop.permute.xlu0 %213 }
  0x83   :  { %v216_v47 = vmul.f32 -1e+09, %v214_v45 }
  0x86   :  { %v207_v46 = vpop.permute.xlu0 %206 }
  0x87   :  { %v215_v48 = vmul.f32 -1e+09, %v207_v46 }
  0xdf   :  { %v561_v40 = vpop.f32.mrb[0].mxu0 }
  0xe0   :  { %v98_v41 = vpop.f32.mrb[1].mxu0 }
  0xe1   :  { %652 = vtanh.f32 %v98_v41 }
  0xe2   :  { %654 = vtanh.f32 %v561_v40 }
  0xeb   :  { %v653_v42 = vpop.eup %652 }
  0xec   :  { %v655_v43 = vpop.eup %654  ;;  %594 = vmatprep.mubr.f32.mxu1 %v653_v42 }
  0xed   :  { %595 = vmatmul.mubr.f32.vlgmr.msra.gmra.mrb[0].mxu1 %v655_v43 }
 0x1c0   :  { %v596_v49 = vpop.f32.mrb[0].mxu1 }
 0x1c1   :  { %v218_v50 = vadd.f32 %v596_v49, %v216_v47  ;;  %v191_v51 = vpop.f32.mrb[1].mxu1 }
 0x1c2   :  { %v217_v52 = vadd.f32 %v215_v48, %v191_v51 }
 0x1c3   :  { %v227_v53 = vsel %vm219_vm1, %v218_v50, -inf }
 0x1c4   :  { %v228_v54 = vrot.slane %v227_v53, 4  ;;  %v220_v55 = vsel %vm219_vm1, %v217_v52, -inf }
 0x1c5   :  { %v221_v56 = vrot.slane %v220_v55, 4 }
 0x1c6   :  { %v229_v57 = vmax.f32 %v227_v53, %v228_v54 }
 0x1c7   :  { %v222_v58 = vmax.f32 %v220_v55, %v221_v56 }
 0x1c8   :  { %v230_v59 = vrot.slane %v229_v57, 2 }
 0x1c9   :  { %v223_v60 = vrot.slane %v222_v58, 2 }
 0x1ca   :  { %v231_v61 = vmax.f32 %v229_v57, %v230_v59 }
 0x1cb   :  { %v224_v62 = vmax.f32 %v222_v58, %v223_v60 }
 0x1cc   :  { %v232_v63 = vrot.slane %v231_v61, 1 }
 0x1cd   :  { %v225_v0 = vrot.slane %v224_v62, 1 }
 0x1ce   :  { %v233_v1 = vmax.f32 %v231_v61, %v232_v63 }
 0x1cf   :  { %v226_v2 = vmax.f32 %v224_v62, %v225_v0 }
 0x1d0   :  { %v235_v3 = vsub.f32 %v218_v50, %v233_v1 }
 0x1d1   :  { %v234_v4 = vsub.f32 %v217_v52, %v226_v2 }
 0x1d2   :  { %v238_v6 = vmul.f32 1.442695, %v235_v3 }
 0x1d3   :  { %v236_v7 = vmul.f32 1.442695, %v234_v4 }
 0x1d4   :  { %656 = vpow2.f32 %v238_v6 }
 0x1d5   :  { %658 = vpow2.f32 %v236_v7 }
 0x1de   :  { %v657_v8 = vpop.eup %656 }
 0x1df   :  { %v659_v9 = vpop.eup %658  ;;  %v247_v10 = vsel %vm219_vm1, %v657_v8, 0.0 }
 0x1e0   :  { %v248_v11 = vrot.slane %v247_v10, 4  ;;  %v240_v12 = vsel %vm219_vm1, %v659_v9, 0.0 }
 0x1e1   :  { %v241_v13 = vrot.slane %v240_v12, 4 }
 0x1e2   :  { %v249_v14 = vadd.f32 %v248_v11, %v247_v10 }
 0x1e3   :  { %v242_v15 = vadd.f32 %v241_v13, %v240_v12 }
 0x1e4   :  { %v250_v17 = vrot.slane %v249_v14, 2 }
 0x1e5   :  { %v243_v18 = vrot.slane %v242_v15, 2 }
 0x1e6   :  { %v251_v19 = vadd.f32 %v250_v17, %v249_v14 }
 0x1e7   :  { %v244_v20 = vadd.f32 %v243_v18, %v242_v15 }
 0x1e8   :  { %v252_v21 = vrot.slane %v251_v19, 1 }
 0x1e9   :  { %v245_v22 = vrot.slane %v244_v20, 1 }
 0x1ea   :  { %v253_v23 = vadd.f32 %v252_v21, %v251_v19 }
 0x1eb   :  { %v246_v24 = vadd.f32 %v245_v22, %v244_v20 }
 0x1ec   :  { %660 = vrcp.f32 %v253_v23 }
 0x1ed   :  { %662 = vrcp.f32 %v246_v24 }
 0x1f6   :  { %v661_v25 = vpop.eup %660 }
 0x1f7   :  { %v663_v26 = vpop.eup %662  ;;  %v257_v27 = vmul.f32 %v661_v25, %v657_v8 }
 0x1f8   :  { %v256_v28 = vmul.f32 %v663_v26, %v659_v9 }
 0x1f9   :  { %275 = vperm.xlu1 %645, %v257_v27  }
 0x1fa   :  { %271 = vperm.xlu0 %648, %v256_v28  }
 0x1fd   :  { %646 = vset.pattern.permute.xlu1 %v689_v29 }
 0x1fe   :  { %285 = vperm.xlu1 %646, %v257_v27   ;;  %650 = vset.pattern.permute.xlu0 %v690_v30 }
 0x1ff   :  { %291 = vperm.xlu0 %650, %v256_v28  }
 0x202   :  { %647 = vset.pattern.permute.xlu1 %v690_v30 }
 0x203   :  { %295 = vperm.xlu1 %647, %v257_v27  }
 0x207   :  { %649 = vset.pattern.permute.xlu1 %v689_v29 }
 0x208   :  { %281 = vperm.xlu1 %649, %v256_v28  }
 0x20c   :  { %651 = vset.pattern.permute.xlu1 %v691_v31 }
 0x20d   :  { %265 = vperm.xlu1 %651, %v257_v27  }
 0x211   :  { %260 = vperm.xlu1 %651, %v256_v28  }
 0x278   :  { %v276_v32 = vpop.permute.xlu1 %275 }
 0x279   :  { %v279_v33 = vmul.f32 %v276_v32, %v761_v16  ;;  %v272_v34 = vpop.permute.xlu0 %271 }
 0x27a   :  { %v278_v35 = vmul.f32 %v272_v34, %v736_v5 }
 0x27b   :  { %v311_v36 = vrot.slane %v279_v33, 1  ;;  %v339_v40 = vrot.slane %v279_v33, 2  ;;  %v363_v45 = vrot.slane %v279_v33, 3  ;;  %v387_v49 = vrot.slane %v279_v33, 4 }
 0x27c   :  { %v310_v37 = vrot.slane %v278_v35, 1  ;;  %v338_v44 = vrot.slane %v278_v35, 2  ;;  %v362_v48 = vrot.slane %v278_v35, 3  ;;  %v386_v51 = vrot.slane %v278_v35, 4 }
 0x27d   :  { %v286_v38 = vpop.permute.xlu1 %285  ;;  %v315_v39 = vadd.f32 %v311_v36, %v279_v33  ;;  %v410_v52 = vrot.slane %v278_v35, 5  ;;  %v411_v55 = vrot.slane %v279_v33, 5  ;;  %v434_v56 = vrot.slane %v278_v35, 6 }
 0x27e   :  { %v805_v41 = vmul.f32 %v286_v38, %v761_v16  ;;  %v292_v42 = vpop.permute.xlu0 %291  ;;  %v314_v43 = vadd.f32 %v310_v37, %v278_v35  ;;  %v435_v60 = vrot.slane %v279_v33, 6  ;;  %v458_v61 = vrot.slane %v278_v35, 7 }
 0x27f   :  { %v808_v46 = vmul.f32 %v292_v42, %v736_v5  ;;  %v343_v47 = vadd.f32 %v339_v40, %v315_v39  ;;  %v459_v62 = vrot.slane %v279_v33, 7 }
 0x280   :  { %v342_v50 = vadd.f32 %v338_v44, %v314_v43  ;;  %v319_v53 = vrot.slane %v805_v41, 1  ;;  %v345_v6 = vrot.slane %v805_v41, 2  ;;  %v369_v7 = vrot.slane %v805_v41, 3 }
 0x281   :  { %v367_v54 = vadd.f32 %v363_v45, %v343_v47  ;;  %v326_v57 = vrot.slane %v808_v46, 1  ;;  %v350_v2 = vrot.slane %v808_v46, 2  ;;  %v374_v11 = vrot.slane %v808_v46, 3 }
 0x282   :  { %v296_v58 = vpop.permute.xlu1 %295  ;;  %v366_v59 = vadd.f32 %v362_v48, %v342_v50  ;;  %v323_v4 = vadd.f32 %v319_v53, %v805_v41  ;;  %v398_v13 = vrot.slane %v808_v46, 4  ;;  %v422_v14 = vrot.slane %v808_v46, 5 }
 0x283   :  { %v813_v63 = vmul.f32 %v296_v58, %v761_v16  ;;  %v391_v0 = vadd.f32 %v387_v49, %v367_v54  ;;  %v330_v1 = vadd.f32 %v326_v57, %v808_v46  ;;  %v446_v15 = vrot.slane %v808_v46, 6 }
 0x284   :  { %v390_v3 = vadd.f32 %v386_v51, %v366_v59  ;;  %v470_v24 = vrot.slane %v808_v46, 7  ;;  %v349_v25 = vadd.f32 %v345_v6, %v323_v4  ;;  %v393_v32 = vrot.slane %v805_v41, 4 }
 0x285   :  { %v415_v8 = vadd.f32 %v411_v55, %v391_v0  ;;  %v327_v9 = vrot.slane %v813_v63, 1  ;;  %v354_v10 = vadd.f32 %v350_v2, %v330_v1  ;;  %v351_v20 = vrot.slane %v813_v63, 2 }
 0x286   :  { %v414_v12 = vadd.f32 %v410_v52, %v390_v3  ;;  %v375_v28 = vrot.slane %v813_v63, 3  ;;  %v417_v33 = vrot.slane %v805_v41, 5  ;;  %v399_v36 = vrot.slane %v813_v63, 4 }
 0x287   :  { %v282_v17 = vpop.permute.xlu1 %281  ;;  %v439_v18 = vadd.f32 %v435_v60, %v415_v8  ;;  %v331_v19 = vadd.f32 %v327_v9, %v813_v63  ;;  %v378_v21 = vadd.f32 %v374_v11, %v354_v10  ;;  %v373_v37 = vadd.f32 %v369_v7, %v349_v25 }
 0x288   :  { %v828_v22 = vmul.f32 %v282_v17, %v736_v5  ;;  %v438_v23 = vadd.f32 %v434_v56, %v414_v12  ;;  %v423_v39 = vrot.slane %v813_v63, 5  ;;  %v447_v47 = vrot.slane %v813_v63, 6 }
 0x289   :  { %v463_v26 = vadd.f32 %v459_v62, %v439_v18  ;;  %v355_v27 = vadd.f32 %v351_v20, %v331_v19  ;;  %v402_v29 = vadd.f32 %v398_v13, %v378_v21  ;;  %v471_v48 = vrot.slane %v813_v63, 7 }
 0x28a   :  { %v462_v30 = vadd.f32 %v458_v61, %v438_v23  ;;  %v318_v31 = vrot.slane %v828_v22, 1  ;;  %v344_v43 = vrot.slane %v828_v22, 2  ;;  %v368_v50 = vrot.slane %v828_v22, 3 }
 0x28b   :  { %v486_v34 = vrot.slane %v463_v26, 7  ;;  %v379_v35 = vadd.f32 %v375_v28, %v355_v27  ;;  %v426_v40 = vadd.f32 %v422_v14, %v402_v29  ;;  %v397_v51 = vadd.f32 %v393_v32, %v373_v37 }
 0x28c   :  { %v266_v38 = vpop.permute.xlu1 %265  ;;  %v322_v42 = vadd.f32 %v318_v31, %v828_v22  ;;  %v392_v53 = vrot.slane %v828_v22, 4  ;;  %v441_v54 = vrot.slane %v805_v41, 6  ;;  %v416_v58 = vrot.slane %v828_v22, 5 }
 0x28d   :  { %v840_v44 = vmul.f32 %v266_v38, %v761_v16  ;;  %v487_v45 = vsel %vm479_vm2, %v486_v34, %v462_v30  ;;  %v403_v46 = vadd.f32 %v399_v36, %v379_v35  ;;  %v450_v56 = vadd.f32 %v446_v15, %v426_v40 }
 0x28e   :  { %488 = vrot.lane.b32.xlu0 %v487_v45, %s692_s1  ;;  %v348_v49 = vadd.f32 %v344_v43, %v322_v42  ;;  %v421_v59 = vadd.f32 %v417_v33, %v397_v51  ;;  %v440_v1 = vrot.slane %v828_v22, 6  ;;  %v465_v3 = vrot.slane %v805_v41, 7 }
 0x28f   :  { %v427_v52 = vadd.f32 %v423_v39, %v403_v46  ;;  %v303_v16 = vrot.slane %v840_v44, 1  ;;  %v333_v63 = vrot.slane %v840_v44, 2  ;;  %v357_v8 = vrot.slane %v840_v44, 3 }
 0x290   :  { %v261_v55 = vpop.permute.xlu1 %260  ;;  %v372_v57 = vadd.f32 %v368_v50, %v348_v49  ;;  %v445_v2 = vadd.f32 %v441_v54, %v421_v59  ;;  %v474_v9 = vadd.f32 %v470_v24, %v450_v56  ;;  %v464_v18 = vrot.slane %v828_v22, 7 }
 0x291   :  { %v268_v60 = vmul.f32 %v261_v55, %v736_v5  ;;  %v451_v61 = vadd.f32 %v447_v47, %v427_v52  ;;  %v307_v62 = vadd.f32 %v303_v16, %v840_v44  ;;  %v381_v5 = vrot.slane %v840_v44, 4 }
 0x292   :  { %v396_v0 = vadd.f32 %v392_v53, %v372_v57  ;;  %v469_v11 = vadd.f32 %v465_v3, %v445_v2  ;;  %v405_v19 = vrot.slane %v840_v44, 5  ;;  %v429_v29 = vrot.slane %v840_v44, 6 }
 0x293   :  { %v475_v4 = vadd.f32 %v471_v48, %v451_v61  ;;  %v302_v6 = vrot.slane %v268_v60, 1  ;;  %v337_v7 = vadd.f32 %v333_v63, %v307_v62  ;;  %v332_v14 = vrot.slane %v268_v60, 2 }
 0x294   :  { %v420_v10 = vadd.f32 %v416_v58, %v396_v0  ;;  %v356_v21 = vrot.slane %v268_v60, 3  ;;  %v495_v25 = vrot.slane %v469_v11, 7  ;;  %v380_v27 = vrot.slane %v268_v60, 4 }
 0x295   :  { %v504_v12 = vrot.slane %v475_v4, 7  ;;  %v306_v13 = vadd.f32 %v302_v6, %v268_v60  ;;  %v361_v15 = vadd.f32 %v357_v8, %v337_v7  ;;  %v404_v31 = vrot.slane %v268_v60, 5 }
 0x296   :  { %v444_v17 = vadd.f32 %v440_v1, %v420_v10  ;;  %v453_v33 = vrot.slane %v840_v44, 7  ;;  %v428_v35 = vrot.slane %v268_v60, 6  ;;  %v452_v38 = vrot.slane %v268_v60, 7 }
 0x297   :  { %v505_v41 = vsel %vm479_vm2, %v504_v12, %v474_v9  ;;  %v336_v20 = vadd.f32 %v332_v14, %v306_v13  ;;  %v385_v23 = vadd.f32 %v381_v5, %v361_v15 }
 0x298   :  { %506 = vrot.lane.b32.xlu0 %v505_v41, %s693_s3  ;;  %v468_v24 = vadd.f32 %v464_v18, %v444_v17 }
 0x299   :  { %v360_v26 = vadd.f32 %v356_v21, %v336_v20  ;;  %v409_v28 = vadd.f32 %v405_v19, %v385_v23 }
 0x29a   :  { %v496_v30 = vsel %vm479_vm2, %v495_v25, %v468_v24 }
 0x29b   :  { %497 = vrot.lane.b32.xlu1 %v496_v30, %s694_s6  ;;  %v384_v22 = vadd.f32 %v380_v27, %v360_v26  ;;  %v433_v32 = vadd.f32 %v429_v29, %v409_v28 }
 0x29d   :  { %v408_v34 = vadd.f32 %v404_v31, %v384_v22  ;;  %v457_v36 = vadd.f32 %v453_v33, %v433_v32 }
 0x29f   :  { %v432_v37 = vadd.f32 %v428_v35, %v408_v34  ;;  %v478_v40 = vrot.slane %v457_v36, 7 }
 0x2a1   :  { %v456_v39 = vadd.f32 %v452_v38, %v432_v37 }
 0x2a3   :  { %v480_v42 = vsel %vm479_vm2, %v478_v40, %v456_v39 }
 0x2a4   :  { %483 = vst.msk [vmem:[#allocation2] sm:$0x3] %vm482_vm3, %v480_v42 }
 0x300   :  { %v489_v43 = vpop.permute.xlu0 %488 }
 0x301   :  { %492 = vst.msk [vmem:[#allocation2] sm:$0x3] %vm491_vm4, %v489_v43 }
 0x30a   :  { %v507_v44 = vpop.permute.xlu0 %506 }
 0x30d   :  { %v498_v45 = vpop.permute.xlu1 %497 }
 0x30e   :  { %501 = vst.msk [vmem:[#allocation2] sm:$0x3] %vm500_vm5, %v498_v45 }
 0x30f   :  { %510 = vst.msk [vmem:[#allocation2] sm:$0x3] %vm509_vm6, %v507_v44 }
 0x310   :  { %675 = shalt.err (!%p672_p4)
}
 0x311   :  { %s676_s12 = scalar_lea.hbm %s880_s4, 32 }
 0x312   :  { %p677_p5 = scmp.ne.s32.totalorder %s880_s4, %s676_s12  ;;  %p680_p6 = scmp.lt.u32.totalorder %s676_s12, %s880_s4 }
 0x314   :  { %p682_p7 = pnand %p680_p6, %p677_p5 }
 0x316   :  { %685 = shalt.err (!%p682_p7)
}
 0x317   :  { %520 = dma.vmem_to_hbm [thread:$0]  %s518_s8, 32, %s880_s4, [#allocation3]  }
 0x318   :  { %686 = dma.done.wait [#allocation3], 32  }
 0x319   :  { %687 = vsyncadd [#allocation3], 4294967264 }
 0x31a   :  { %524 = vsyncpa [#allocation3], 1 }

</bundles_post_ra>
